<compile_context>
chip_gen: v7x
topology: tpu7x:2x2x1
jax: 0.10.0
libtpu: 0.0.40
codegen_flags: <defaults>
</compile_context>

<pallas_src>
import jax
import jax.numpy as jnp
from jax.experimental import pallas as pl
from jax.experimental.pallas import tpu as pltpu


def _cdiv(a, b):
    return (a + b - 1) // b


def _round_up(n, m):
    return _cdiv(n, m) * m


def _make_kernel(*, tb, hw_true, hw_chunk, tail_valid, needs_mask):
    """Builds the kernel with static tiling / masking info closed over."""
    inv_hw = 1.0 / float(hw_true)

    def kernel(x_ref, w1t_ref, w2t_ref, o_ref, acc_ref):
        # x_ref:   (TB, C, HW_CHUNK)                 input tile
        # w1t_ref: (C, hidden)   w2t_ref: (hidden, C)  shared-MLP weights
        # o_ref:   (TB, 1, C)                         attention output tile
        # acc_ref: (2*TB, C) f32 scratch: rows [0:TB] running sum,
        #                                  rows [TB:2TB] running max.
        k = pl.program_id(1)
        nk = pl.num_programs(1)
        c = acc_ref.shape[1]

        @pl.when(k == 0)
        def _init():
            acc_ref[0:tb, :] = jnp.zeros((tb, c), jnp.float32)
            acc_ref[tb:2 * tb, :] = jnp.full((tb, c), -jnp.inf, jnp.float32)

        x = x_ref[...].astype(jnp.float32)                    # (TB, C, HW_CHUNK)

        def _accumulate(xs, xm):
            acc_ref[0:tb, :] = acc_ref[0:tb, :] + jnp.sum(xs, axis=-1)
            acc_ref[tb:2 * tb, :] = jnp.maximum(acc_ref[tb:2 * tb, :],
                                                jnp.max(xm, axis=-1))

        if needs_mask:
            # Full chunks: unmasked fast path (2 VPU ops / element).
            @pl.when(k < nk - 1)
            def _full():
                _accumulate(x, x)

            # Tail chunk: out-of-bounds lanes are undefined -> mask sum AND max.
            @pl.when(k == nk - 1)
            def _tail():
                lane = jax.lax.broadcasted_iota(jnp.int32, (1, 1, hw_chunk), 2)
                valid = lane < tail_valid
                _accumulate(jnp.where(valid, x, 0.0),
                            jnp.where(valid, x, -jnp.inf))
        else:
            _accumulate(x, x)

        @pl.when(k == nk - 1)
        def _finalize():
            acc = acc_ref[...]                                          # (2TB, C)
            row = jax.lax.broadcasted_iota(jnp.int32, (2 * tb, 1), 0)
            pooled = acc * jnp.where(row < tb, inv_hw, 1.0)             # avg | max
            # One fused MLP pass over both pooled vectors of every batch row.
            h = jnp.maximum(
                jnp.dot(pooled, w1t_ref[...],
                        preferred_element_type=jnp.float32), 0.0)       # (2TB, hid)
            y = jnp.dot(h, w2t_ref[...],
                        preferred_element_type=jnp.float32)             # (2TB, C)
            att = jax.nn.sigmoid(y[0:tb, :] + y[tb:2 * tb, :])          # (TB, C)
            o_ref[...] = att.reshape(o_ref.shape).astype(o_ref.dtype)

    return kernel


def channel_attention(x_nchw, w1, w2, *, max_chunk_bytes=8 * 1024 * 1024):
    """x_nchw: (B, C, H, W); w1: (hidden, C); w2: (C, hidden).

    Returns (B, C, 1, 1) = sigmoid(fc(avgpool(x)) + fc(maxpool(x))).
    Accepts f32 or bf16 activations (accumulation / MLP are f32 in-kernel).
    """
    B, C, H, W = x_nchw.shape
    hidden = w1.shape[0]
    HW = H * W
    itemsize = x_nchw.dtype.itemsize

    # Batch tile: at most 8 rows, but keep >=2 tiles on the "parallel" batch
    # axis when B >= 2 so both v7x TensorCores get work.
    TB = 8 if B >= 16 else max(1, min(8, _cdiv(B, 2)))
    # Prefer >=512 lanes per spatial chunk: shrink TB before shrinking lanes.
    while TB > 1 and TB * C * itemsize * 512 > max_chunk_bytes:
        TB = max(1, TB // 2)

    # Spatial chunk: even split of round_up(HW, 128) under the byte budget
    # (minimizes tail waste); a single chunk uses the full HW dim (no mask).
    lane_budget = max(128, (max_chunk_bytes // (TB * C * itemsize)) // 128 * 128)
    hw128 = _round_up(HW, 128)
    if hw128 <= lane_budget:
        HW_CHUNK = HW
        n_hw = 1
        tail_valid = HW
    else:
        n_hw = _cdiv(hw128, lane_budget)
        HW_CHUNK = _round_up(_cdiv(hw128, n_hw), 128)
        n_hw = _cdiv(HW, HW_CHUNK)
        tail_valid = HW - (n_hw - 1) * HW_CHUNK
    needs_mask = tail_valid != HW_CHUNK

    x = x_nchw.reshape(B, C, HW)      # contiguous collapse: no pad, no copy
    w1t = w1.T                        # (C, hidden)
    w2t = w2.T                        # (hidden, C)

    kernel = _make_kernel(tb=TB, hw_true=HW, hw_chunk=HW_CHUNK,
                          tail_valid=tail_valid, needs_mask=needs_mask)

    n_b = _cdiv(B, TB)
    cost = pl.CostEstimate(
        flops=2 * B * C * HW + 2 * (2 * B) * C * hidden * 2,
        transcendentals=B * C,
        bytes_accessed=B * C * HW * itemsize + B * C * itemsize
        + 2 * C * hidden * 4,
    )

    out = pl.pallas_call(
        kernel,
        out_shape=jax.ShapeDtypeStruct((B, 1, C), x_nchw.dtype),
        grid_spec=pltpu.PrefetchScalarGridSpec(
            num_scalar_prefetch=0,
            grid=(n_b, n_hw),
            in_specs=[
                pl.BlockSpec((TB, C, HW_CHUNK), lambda b, k: (b, 0, k)),
                pl.BlockSpec((C, hidden), lambda b, k: (0, 0)),
                pl.BlockSpec((hidden, C), lambda b, k: (0, 0)),
            ],
            out_specs=pl.BlockSpec((TB, 1, C), lambda b, k: (b, 0, 0)),
            scratch_shapes=[pltpu.VMEM((2 * TB, C), jnp.float32)],
        ),
        compiler_params=pltpu.CompilerParams(
            dimension_semantics=("parallel", "arbitrary"),
            vmem_limit_bytes=32 * 1024 * 1024,
        ),
        cost_estimate=cost,
    )(x, w1t, w2t)

    return out.reshape(B, C, 1, 1)


def reference(x_nchw, w1, w2):
    # Pure-JAX reference of the PyTorch forward.
    avg = jnp.mean(x_nchw, axis=(2, 3))            # (B, C)
    mx = jnp.max(x_nchw, axis=(2, 3))              # (B, C)

    def fc(v):                                     # v: (B, C)
        h = jnp.maximum(v @ w1.T, 0.0)             # (B, hidden)
        return h @ w2.T                            # (B, C)

    out = jax.nn.sigmoid(fc(avg) + fc(mx))
    return out.reshape(*out.shape, 1, 1)


if __name__ == "__main__":
    B, C, H, W = 2, 64, 16, 16
    ratio = 16
    hidden = C // ratio

    key = jax.random.PRNGKey(0)
    kx, k1, k2 = jax.random.split(key, 3)

    x = jax.random.normal(kx, (B, C, H, W), dtype=jnp.float32)
    # PyTorch 1x1 conv weights (out, in, 1, 1) squeezed to (out, in).
    w1 = jax.random.normal(k1, (hidden, C), dtype=jnp.float32) * (1.0 / C) ** 0.5
    w2 = jax.random.normal(k2, (C, hidden), dtype=jnp.float32) * (1.0 / hidden) ** 0.5

    out = channel_attention(x, w1, w2)
    out = jax.block_until_ready(out)

    ref = reference(x, w1, w2)
    assert out.shape == (B, C, 1, 1), out.shape
    assert jnp.allclose(out, ref, atol=1e-5, rtol=1e-5), "mismatch vs reference"

    print("KERNEL_OK")
</pallas_src>

<mosaic_0001>
module attributes {stable_mosaic.version = 11 : i64} {
  func.func @kernel(%arg0: i32, %arg1: i32, %arg2: memref<1x64x256xf32, #tpu.memory_space<vmem>>, %arg3: memref<64x4xf32, #tpu.memory_space<vmem>>, %arg4: memref<4x64xf32, #tpu.memory_space<vmem>>, %arg5: memref<1x1x64xf32, #tpu.memory_space<vmem>>, %arg6: memref<2x64xf32, #tpu.memory_space<vmem>>) attributes {dimension_semantics = [#tpu.dimension_semantics<parallel>, #tpu.dimension_semantics<arbitrary>], iteration_bounds = array<i64: 2, 1>, scalar_prefetch = 0 : i64, scratch_operands = 1 : i64, tpu.core_type = #tpu.core_type<tc>, window_params = [{transform_indices = @transform_0, window_bounds = array<i64: 1, 64, 256>}, {pipeline_mode = #tpu.pipeline_mode<synchronous>, transform_indices = @transform_1, window_bounds = array<i64: 64, 4>}, {pipeline_mode = #tpu.pipeline_mode<synchronous>, transform_indices = @transform_2, window_bounds = array<i64: 4, 64>}, {transform_indices = @transform_3, window_bounds = array<i64: 1, 1, 64>}]} {
    %c0_i32 = arith.constant 0 : i32
    %0 = arith.cmpi eq, %arg1, %c0_i32 : i32
    %1 = arith.extui %0 : i1 to i32
    %c0_i32_0 = arith.constant 0 : i32
    %2 = arith.cmpi ne, %1, %c0_i32_0 : i32
    scf.if %2 {
      %cst_13 = arith.constant 0.000000e+00 : f32
      %15 = vector.broadcast %cst_13 : f32 to vector<1x64xf32>
      %c0_14 = arith.constant 0 : index
      %c0_15 = arith.constant 0 : index
      %16 = vector.load %arg6[%c0_14, %c0_15] : memref<2x64xf32, #tpu.memory_space<vmem>>, vector<1x64xf32>
      tpu.vector_store %arg6[%c0_14, %c0_15], %15 {strides = array<i32>} : memref<2x64xf32, #tpu.memory_space<vmem>>, vector<1x64xf32>,
      %cst_16 = arith.constant 0xFF800000 : f32
      %17 = vector.broadcast %cst_16 : f32 to vector<1x64xf32>
      %c1_17 = arith.constant 1 : index
      %c0_18 = arith.constant 0 : index
      %18 = vector.load %arg6[%c1_17, %c0_18] : memref<2x64xf32, #tpu.memory_space<vmem>>, vector<1x64xf32>
      tpu.vector_store %arg6[%c1_17, %c0_18], %17 {strides = array<i32>} : memref<2x64xf32, #tpu.memory_space<vmem>>, vector<1x64xf32>,
    } else {
    }
    %c0 = arith.constant 0 : index
    %c0_1 = arith.constant 0 : index
    %c0_2 = arith.constant 0 : index
    %3 = vector.load %arg2[%c0, %c0_1, %c0_2] : memref<1x64x256xf32, #tpu.memory_space<vmem>>, vector<1x64x256xf32>
    %c0_3 = arith.constant 0 : index
    %c0_4 = arith.constant 0 : index
    %4 = vector.load %arg6[%c0_3, %c0_4] : memref<2x64xf32, #tpu.memory_space<vmem>>, vector<1x64xf32>
    %cst = arith.constant dense<0.000000e+00> : vector<1x64xf32>
    %5 = vector.multi_reduction <add>, %3, %cst [2] : vector<1x64x256xf32> to vector<1x64xf32>
    %6 = arith.addf %4, %5 : vector<1x64xf32>
    %c0_5 = arith.constant 0 : index
    %c0_6 = arith.constant 0 : index
    %7 = vector.load %arg6[%c0_5, %c0_6] : memref<2x64xf32, #tpu.memory_space<vmem>>, vector<1x64xf32>
    tpu.vector_store %arg6[%c0_5, %c0_6], %6 {strides = array<i32>} : memref<2x64xf32, #tpu.memory_space<vmem>>, vector<1x64xf32>,
    %c1 = arith.constant 1 : index
    %c0_7 = arith.constant 0 : index
    %8 = vector.load %arg6[%c1, %c0_7] : memref<2x64xf32, #tpu.memory_space<vmem>>, vector<1x64xf32>
    %cst_8 = arith.constant dense<0xFF800000> : vector<1x64xf32>
    %9 = vector.multi_reduction <maximumf>, %3, %cst_8 [2] : vector<1x64x256xf32> to vector<1x64xf32>
    %10 = arith.maximumf %8, %9 : vector<1x64xf32>
    %c1_9 = arith.constant 1 : index
    %c0_10 = arith.constant 0 : index
    %11 = vector.load %arg6[%c1_9, %c0_10] : memref<2x64xf32, #tpu.memory_space<vmem>>, vector<1x64xf32>
    tpu.vector_store %arg6[%c1_9, %c0_10], %10 {strides = array<i32>} : memref<2x64xf32, #tpu.memory_space<vmem>>, vector<1x64xf32>,
    %c0_i32_11 = arith.constant 0 : i32
    %12 = arith.cmpi eq, %arg1, %c0_i32_11 : i32
    %13 = arith.extui %12 : i1 to i32
    %c0_i32_12 = arith.constant 0 : i32
    %14 = arith.cmpi ne, %13, %c0_i32_12 : i32
    scf.if %14 {
      %c0_13 = arith.constant 0 : index
      %c0_14 = arith.constant 0 : index
      %15 = vector.load %arg6[%c0_13, %c0_14] : memref<2x64xf32, #tpu.memory_space<vmem>>, vector<2x64xf32>
      %16 = tpu.iota {dimensions = array<i32: 0>} : vector<2x1xi32>
      %c1_i32 = arith.constant 1 : i32
      %17 = vector.broadcast %c1_i32 : i32 to vector<2x1xi32>
      %18 = arith.cmpi slt, %16, %17 : vector<2x1xi32>
      %cst_15 = arith.constant 3.906250e-03 : f32
      %cst_16 = arith.constant 1.000000e+00 : f32
      %19 = vector.broadcast %cst_15 : f32 to vector<2x1xf32>
      %20 = vector.broadcast %cst_16 : f32 to vector<2x1xf32>
      %21 = arith.select %18, %19, %20 : vector<2x1xi1>, vector<2x1xf32>
      %22 = vector.broadcast %21 : vector<2x1xf32> to vector<2x64xf32>
      %23 = arith.mulf %15, %22 : vector<2x64xf32>
      %c0_17 = arith.constant 0 : index
      %c0_18 = arith.constant 0 : index
      %24 = vector.load %arg3[%c0_17, %c0_18] : memref<64x4xf32, #tpu.memory_space<vmem>>, vector<64x4xf32>
      %cst_19 = arith.constant dense<0.000000e+00> : vector<2x4xf32>
      %25 = tpu.matmul %23, %24, %cst_19 {dimension_numbers = #tpu.dot_dimension_numbers<[1], [0], [0], [1], [0, 0, 1, 1], [], []>} : vector<2x64xf32>, vector<64x4xf32>, vector<2x4xf32> -> vector<2x4xf32>
      %cst_20 = arith.constant 0.000000e+00 : f32
      %26 = vector.broadcast %cst_20 : f32 to vector<2x4xf32>
      %27 = arith.maximumf %25, %26 : vector<2x4xf32>
      %c0_21 = arith.constant 0 : index
      %c0_22 = arith.constant 0 : index
      %28 = vector.load %arg4[%c0_21, %c0_22] : memref<4x64xf32, #tpu.memory_space<vmem>>, vector<4x64xf32>
      %cst_23 = arith.constant dense<0.000000e+00> : vector<2x64xf32>
      %29 = tpu.matmul %27, %28, %cst_23 {dimension_numbers = #tpu.dot_dimension_numbers<[1], [0], [0], [1], [0, 0, 1, 1], [], []>} : vector<2x4xf32>, vector<4x64xf32>, vector<2x64xf32> -> vector<2x64xf32>
      %30 = vector.extract_strided_slice %29 {offsets = [0, 0], sizes = [1, 64], strides = [1, 1]} : vector<2x64xf32> to vector<1x64xf32>
      %31 = vector.extract_strided_slice %29 {offsets = [1, 0], sizes = [1, 64], strides = [1, 1]} : vector<2x64xf32> to vector<1x64xf32>
      %32 = arith.addf %30, %31 : vector<1x64xf32>
      %33 = arith.negf %32 : vector<1x64xf32>
      %34 = math.exp %33 : vector<1x64xf32>
      %cst_24 = arith.constant 1.000000e+00 : f32
      %35 = vector.broadcast %cst_24 : f32 to vector<1x64xf32>
      %36 = arith.addf %35, %34 : vector<1x64xf32>
      %37 = arith.divf %35, %36 : vector<1x64xf32>
      %38 = vector.shape_cast %37 : vector<1x64xf32> to vector<1x1x64xf32>
      %c0_25 = arith.constant 0 : index
      %c0_26 = arith.constant 0 : index
      %c0_27 = arith.constant 0 : index
      %39 = vector.load %arg5[%c0_25, %c0_26, %c0_27] : memref<1x1x64xf32, #tpu.memory_space<vmem>>, vector<1x1x64xf32>
      tpu.vector_store %arg5[%c0_25, %c0_26, %c0_27], %38 {strides = array<i32>} : memref<1x1x64xf32, #tpu.memory_space<vmem>>, vector<1x1x64xf32>,
    } else {
    }
    return
  }
  func.func @transform_0(%arg0: i32, %arg1: i32) -> (i32, i32, i32) {
    %c0_i32 = arith.constant 0 : i32
    %c0_i32_0 = arith.constant 0 : i32
    return %arg0, %c0_i32, %arg1 : i32, i32, i32
  }
  func.func @transform_1(%arg0: i32, %arg1: i32) -> (i32, i32) {
    %c0_i32 = arith.constant 0 : i32
    %c0_i32_0 = arith.constant 0 : i32
    %c0_i32_1 = arith.constant 0 : i32
    return %c0_i32, %c0_i32_0 : i32, i32
  }
  func.func @transform_2(%arg0: i32, %arg1: i32) -> (i32, i32) {
    %c0_i32 = arith.constant 0 : i32
    %c0_i32_0 = arith.constant 0 : i32
    %c0_i32_1 = arith.constant 0 : i32
    return %c0_i32, %c0_i32_0 : i32, i32
  }
  func.func @transform_3(%arg0: i32, %arg1: i32) -> (i32, i32, i32) {
    %c0_i32 = arith.constant 0 : i32
    %c0_i32_0 = arith.constant 0 : i32
    %c0_i32_1 = arith.constant 0 : i32
    return %arg0, %c0_i32, %c0_i32_0 : i32, i32, i32
  }
}

</mosaic_0001>

<bundles_post_ra>
// kernel: tpu_custom_call.1
= control target key start
LH: loop header
LB: loop body
LE: loop exit
PB: predicated region body
PF: predicated region fallthrough
CT: control target
= control target key end

     0   :  { %8 = vsyncpa [#allocation4], 0  ;;  %s1192_s0 = inlined_call_operand.hbm [shape: f32[2,64,256], index: 0, kind: input, shape index: {}]   ;;  %s1193_s1 = inlined_call_operand.vmem [shape: f32[64,4], index: 1, kind: input, shape index: {}]   ;;  %s1194_s2 = inlined_call_operand.vmem [shape: f32[4,64], index: 2, kind: input, shape index: {}]   ;;  %s1195_s3 = inlined_call_operand.hbm [shape: f32[2,1,64], index: 3, kind: output, shape index: {}]  }
   0x1   :  { %10 = vsyncpa [#allocation4 + $0x1], 0 }
   0x2   :  { %11 = vsyncpa [#allocation5], 0 }
   0x3   :  { %13 = vsyncpa [#allocation5 + $0x1], 0  ;;  %s947_s12 = smov 0   ;;  %s949_s13 = smov 0  }
   0x4   :  { %s951_s14 = smov 0   ;;  %s953_s15 = smov 0  }
   0x5   :  { %s955_s16 = smov 0   ;;  %s957_s17 = smov 0  }
   0x6 LB: > { %s667_s18 = sadd.s32 4294967295, %s916_s17   ;;  %s668_s19 = sadd.s32 4294967294, %s916_s17   ;;  %s916_s17 = sphi %s957_s17, %s19_s17   ;;  %s912_s16 = sphi %s955_s16, %s1210_s16   ;;  %s908_s15 = sphi %s953_s15, %s1209_s15   ;;  %s904_s14 = sphi %s951_s14, %s1208_s14   ;;  %s900_s13 = sphi %s949_s13, %s1207_s13   ;;  %s896_s12 = sphi %s947_s12, %s1206_s12  }
   0x7   : > { %s31_s20 = sadd.s32 1, %s912_s16  ;;  %s40_s21 = sadd.s32 1, %s904_s14 }
   0x8   : > { %p33_p0 = scmp.ge.s32.totalorder %s31_s20, 2  ;;  %p47_p1 = scmp.ne.s32.totalorder %s904_s14, %s900_s13 }
   0x9   : > { %p48_p2 = scmp.eq.s32.totalorder %s916_s17, 0  ;;  %p53_p3 = scmp.ne.s32.totalorder %s900_s13, %s896_s12 }
   0xa   : > { %s1212_s20 = smov (%p33_p0, %s31_s20), 0  ;;  %p54_p5 = scmp.eq.s32.totalorder %s667_s18, 0 }
   0xb   : > { %p988_p4 = por %p48_p2, %p47_p1  ;;  %s35_s23 = ssub.s32 %s912_s16, %s1212_s20 }
   0xc   : > { %p119_p6 = scmp.eq.s32.totalorder %s667_s18, 1  ;;  %p38_p7 = scmp.eq.s32.totalorder %s35_s23, 0 }
   0xd   : > { %p994_p8 = por %p54_p5, %p53_p3  ;;  %p125_p10 = scmp.eq.s32.totalorder %s668_s19, 1 }
   0xe   : > { %p998_p9 = por %p119_p6, %p47_p1  ;;  %p743_p13 = scmp.lt.s32.totalorder %s916_s17, 2 }
   0xf   : > { %s1003_s26 = scalar_select %p38_p7, %s904_s14, %s40_s21  }
  0x10   : > { %s1199_s25 = scalar_select %p998_p9, 1, 0 }
  0x11   : > { %p1005_p11 = por %p125_p10, %p53_p3  ;;  %s151_s28 = sand.u32 1, %s904_s14  }
  0x12   : > { %s671_s29 = sshll.u32 %s151_s28, 7  ;;  %s683_s30 = sshll.u32 %s912_s16, 11 }
  0x13   : > { %s1200_s27 = scalar_select %p1005_p11, 1, 0 }
  0x14   : > { %s1016_s6 = scalar_lea.hbm %s1192_s0, %s683_s30  ;;  %s155_s7 = scalar_lea.vmem [#allocation3], %s671_s29 }
  0x15   : > { %s164_s8 = sshll.u32 %s155_s7, 4  ;;  %p1022_p0 = pnand %p743_p13, %p988_p4  ;;  %s1018_s8 = int_to_ptr.vmem [resolvable:$true] %s164_s8 }
  0x16   : > { %s1027_s10 = scalar_lea.sflag [#allocation4], %s151_s28  ;;  %s804_s11 = scalar_lea.hbm %s1016_s6, 2048 }
  0x17   : > { %p805_p2 = scmp.ne.s32.totalorder %s1016_s6, %s804_s11  ;;  %p806_p3 = pneg %p1022_p0 }
  0x18   : > { %s809_s21 = scalar_lea.hbm %s1192_s0, 4096  ;;  %p810_p4 = scmp.lt.u32.totalorder %s1016_s6, %s1192_s0 }
  0x19   : > { %p807_p5 = pnand %p806_p3, %p805_p2  ;;  %p811_p7 = scmp.lt.u32.totalorder %s809_s21, %s804_s11 }
  0x1a   : > { %p813_p13 = scmp.lt.u32.totalorder %s804_s11, %s1016_s6 }
  0x1b   : > { %p808_p6 = pneg %p807_p5  ;;  %p812_p10 = por %p811_p7, %p810_p4 }
  0x1d   : > { %p814_p12 = por %p813_p13, %p812_p10 }
  0x1f   : > { %p815_p1 = pnand %p814_p12, %p808_p6 }
  0x21   : > { %818 = shalt.err (!%p815_p1)
}
  0x22   : > { %s819_s28 = scalar_lea.vmem %s1018_s8, 2048  ;;  %s918_s29 = smov [#allocation3]  }
  0x23   : > { %p820_p2 = scmp.ne.s32.totalorder %s1018_s8, %s819_s28  ;;  %s824_s30 = sshll.u32 %s918_s29, 4  ;;  %s825_s30 = int_to_ptr.vmem [resolvable:$false] %s824_s30 }
  0x24   : > { %s826_s4 = scalar_lea.vmem %s825_s30, 4096  ;;  %p827_p9 = scmp.lt.s32.totalorder %s1018_s8, %s825_s30 }
  0x25   : > { %p822_p5 = pnand %p820_p2, %p806_p3  ;;  %p828_p4 = scmp.lt.s32.totalorder %s826_s4, %s819_s28 }
  0x27   : > { %p823_p11 = pneg %p822_p5  ;;  %p829_p7 = por %p828_p4, %p827_p9 }
  0x29   : > { %p830_p10 = pnand %p829_p7, %p823_p11 }
  0x2b   : > { %833 = shalt.err (!%p830_p10)
}
  0x2c   : > { %s919_s5 = smov 256   ;;  %s920_s7 = smov 16  }
  0x2d   : > { %738 = dma.hbm_to_vmem [thread:$0]  (!%p1022_p0), %s1016_s6, 2048, %s1018_s8, %s1027_s10, %s919_s5, %s919_s5, %s920_s7  }
  0x2e   : > { %p172_p12 = scmp.lt.s32.totalorder %s916_s17, 3  ;;  %p1202_p1 = scmp.ge.s32.totalorder %s916_s17, 1 }
  0x30   : > { %p173_p3 = pnand %p1202_p1, %p172_p12 }
  0x31   : > { %s1059_s11 = sand.u32 (!%p173_p3), 1, %s900_s13  }
  0x32   : > { %176 = sbr.rel (%p173_p3) target bundleno = 716 (0x2cc), region = 32  ;;  %s675_s18 = sshll.u32 (!%p173_p3), %s1059_s11, 7 }
  0x33   : > { %s179_s19 = scalar_lea.sflag (!%p173_p3), [#allocation4], %s1059_s11  ;;  %s1063_s21 = scalar_lea.vmem (!%p173_p3), [#allocation3], %s675_s18 }
  0x39   : > { %887 = dma.done.wait (%p994_p8), %s179_s19, 2048  }
  0x3a   : > { %889 = vsyncadd (%p994_p8), %s179_s19, 4294965248  ;;  %v212_v0 = vld [vmem:[%s1063_s21] sm:$0xff]  ;;  %v213_v1 = vld [vmem:[%s1063_s21 + $0x8] sm:$0xff]  ;;  %vm209_vm0 = vcmask 516096   ;;  %v921_v32 = vmov -inf   ;;  %v922_v33 = vmov 0.0   ;;  %v261_v51 = vlaneseq }
  0x3b   : > { %v214_v2 = vld [vmem:[%s1063_s21 + $0x10] sm:$0xff]  ;;  %v321_v3 = vmax.f32 %v212_v0, %v213_v1  ;;  %v229_v4 = vadd.f32 %v213_v1, %v212_v0  ;;  %v215_v5 = vld [vmem:[%s1063_s21 + $0x18] sm:$0xff]  ;;  %v216_v8 = vld [vmem:[%s1063_s21 + $0x20] sm:$0xff]  ;;  %211 = vst.msk [vmem:[#allocation2 + $0x1] sm:$0x1] %vm209_vm0, %v921_v32  ;;  %714 = vmatprep.subr.mxu1 %v922_v33  ;;  %v923_v37 = vmov 0.0|0.0  }
  0x3c   : > { %v324_v6 = vmax.f32 %v214_v2, %v215_v5  ;;  %v232_v7 = vadd.f32 %v215_v5, %v214_v2  ;;  %v217_v9 = vld [vmem:[%s1063_s21 + $0x28] sm:$0xff]  ;;  %v218_v12 = vld [vmem:[%s1063_s21 + $0x30] sm:$0xff]  ;;  %v219_v13 = vld [vmem:[%s1063_s21 + $0x38] sm:$0xff]  ;;  %210 = vst.msk [vmem:[#allocation2] sm:$0x1] %vm209_vm0, %v922_v33  ;;  %719 = vmatprep.subr.bf16.mxu0 %v923_v37  ;;  %vm924_vm1 = vmmov 0  }
  0x3d   : > { %322 = vmax.xlane.f32.xlu1 %v321_v3  ;;  %230 = vadd.xlane.f32.xlu0 %v229_v4  ;;  %v327_v10 = vmax.f32 %v216_v8, %v217_v9  ;;  %v235_v11 = vadd.f32 %v217_v9, %v216_v8  ;;  %v330_v14 = vmax.f32 %v218_v12, %v219_v13  ;;  %v220_v16 = vld [vmem:[%s1063_s21 + $0x40] sm:$0xff]  ;;  %v221_v17 = vld [vmem:[%s1063_s21 + $0x48] sm:$0xff]  ;;  %v222_v20 = vld [vmem:[%s1063_s21 + $0x50] sm:$0xff]  ;;  %v262_v54 = vand.u32 127, %v261_v51  ;;  %s680_s8 = sshll.u32 %s908_s15, 4  ;;  %s203_s9 = scalar_lea.vmem [#allocation6], %s1059_s11 }
  0x3e   : > { %v238_v15 = vadd.f32 %v219_v13, %v218_v12  ;;  %v333_v18 = vmax.f32 %v220_v16, %v221_v17  ;;  %v241_v19 = vadd.f32 %v221_v17, %v220_v16  ;;  %v223_v21 = vld [vmem:[%s1063_s21 + $0x58] sm:$0xff]  ;;  %v224_v24 = vld [vmem:[%s1063_s21 + $0x60] sm:$0xff]  ;;  %v225_v25 = vld [vmem:[%s1063_s21 + $0x68] sm:$0xff]  ;;  %711 = vmatprep.mubr.msk.f32.mxu0 %vm924_vm1, %v922_v33  ;;  %716 = vmatprep.mubr.msk.f32.mxu1 %vm924_vm1, %v922_v33  ;;  %v1111_v59 = vshrl.u32 %v261_v51, 7  ;;  %s590_s10 = sshll.u32 %s203_s9, 4  ;;  %s1142_s28 = scalar_lea.hbm %s1195_s3, %s680_s8  ;;  %s1144_s10 = int_to_ptr.vmem [resolvable:$true] %s590_s10 }
  0x3f   : > { %v336_v22 = vmax.f32 %v222_v20, %v223_v21  ;;  %v244_v23 = vadd.f32 %v223_v21, %v222_v20  ;;  %v339_v26 = vmax.f32 %v224_v24, %v225_v25  ;;  %v247_v27 = vadd.f32 %v225_v25, %v224_v24  ;;  %v226_v28 = vld [vmem:[%s1063_s21 + $0x70] sm:$0xff]  ;;  %v227_v29 = vld [vmem:[%s1063_s21 + $0x78] sm:$0xff]  ;;  %v405_v35 = vld [vmem:[%s1193_s1 + $0x8] sm:$0xff]  ;;  %s578_s29 = scalar_lea.sflag [#allocation5], %s1059_s11  ;;  %s834_s30 = scalar_lea.vmem %s1144_s10, 16 }
  0x40   : > { %v342_v30 = vmax.f32 %v226_v28, %v227_v29  ;;  %v250_v31 = vadd.f32 %v227_v29, %v226_v28  ;;  %v404_v34 = vld [vmem:[%s1193_s1] sm:$0xff]  ;;  %v406_v38 = vld [vmem:[%s1193_s1 + $0x10] sm:$0xff]  ;;  %v407_v39 = vld [vmem:[%s1193_s1 + $0x18] sm:$0xff]  ;;  %v267_v57 = vadd.s32 4294967288, %v262_v54  ;;  %v274_v58 = vadd.s32 4294967280, %v262_v54  ;;  %p835_p8 = scmp.ne.s32.totalorder %s1144_s10, %s834_s30  ;;  %p1203_p9 = scmp.ne.s32.totalorder %s1199_s25, 0 }
  0x41   : > { %325 = vmax.xlane.f32.xlu1 %v324_v6  ;;  %233 = vadd.xlane.f32.xlu0 %v232_v7  ;;  %v720_v36 = vpack.c.bf16 %v405_v35, %v404_v34  ;;  %v723_v40 = vpack.c.bf16 %v407_v39, %v406_v38  ;;  %v408_v41 = vld [vmem:[%s1193_s1 + $0x20] sm:$0xff]  ;;  %v409_v42 = vld [vmem:[%s1193_s1 + $0x28] sm:$0xff]  ;;  %v410_v43 = vld [vmem:[%s1193_s1 + $0x30] sm:$0xff]  ;;  %v281_v60 = vadd.s32 4294967272, %v262_v54  ;;  %v288_v61 = vadd.s32 4294967264, %v262_v54  ;;  %s926_s15 = smov [#allocation6]  }
  0x42   : > { %v726_v44 = vpack.c.bf16 %v409_v42, %v408_v41  ;;  %v411_v45 = vld [vmem:[%s1193_s1 + $0x38] sm:$0xff]  ;;  %v270_v0 = vsub.s32 %v267_v57, %v1111_v59  ;;  %v295_v1 = vadd.s32 4294967256, %v262_v54  ;;  %v277_v2 = vsub.s32 %v274_v58, %v1111_v59  ;;  %v320_v41 = vld [vmem:[#allocation2 + $0x1] sm:$0x1]  ;;  %p836_p11 = pnand %p835_p8, %p1203_p9  ;;  %s838_s4 = sshll.u32 %s926_s15, 4  ;;  %s839_s4 = int_to_ptr.vmem [resolvable:$false] %s838_s4 }
  0x43   : > { %721 = vmatpush3.bf16.msra.mxu0 %v720_v36  ;;  %v729_v46 = vpack.c.bf16 %v411_v45, %v410_v43  ;;  %v302_v3 = vadd.s32 4294967248, %v262_v54  ;;  %v265_v4 = vsub.s32 %v262_v54, %v1111_v59  ;;  %v284_v5 = vsub.s32 %v281_v60, %v1111_v59  ;;  %s840_s5 = scalar_lea.vmem %s839_s4, 32  ;;  %p841_p6 = scmp.lt.s32.totalorder %s1144_s10, %s839_s4 }
  0x44   : > { %722 = vmatprep.subr.bf16.mxu0 %v923_v37  ;;  %vm272_vm2 = vcmask 130112   ;;  %vm279_vm3 = vcmask 195712   ;;  %v291_v6 = vsub.s32 %v288_v61, %v1111_v59  ;;  %v309_v9 = vadd.s32 4294967240, %v262_v54  ;;  %p837_p0 = pneg %p836_p11  ;;  %p842_p13 = scmp.lt.s32.totalorder %s840_s5, %s834_s30 }
  0x45   : > { %328 = vmax.xlane.f32.xlu1 %v327_v10  ;;  %236 = vadd.xlane.f32.xlu0 %v235_v11  ;;  %vm286_vm4 = vcmask 261312   ;;  %v298_v12 = vsub.s32 %v295_v1, %v1111_v59  ;;  %vm293_vm5 = vcmask 326912   ;;  %vm300_vm6 = vcmask 392512  }
  0x46   : > { %v312_v24 = vsub.s32 %v309_v9, %v1111_v59  ;;  %vm307_vm7 = vcmask 458112   ;;  %vm314_vm8 = vcmask 523712   ;;  %vm401_vm9 = vcmp.lt.s32.totalorder %v1111_v59, 1  ;;  %p843_p2 = por %p842_p13, %p841_p6 }
  0x47   : > { %724 = vmatpush3.bf16.msra.mxu0 %v723_v40  ;;  %v925_v51 = vmov 1.0   ;;  %vm412_vm10 = vcmask 523264   ;;  %vm492_vm11 = vcmask 1043456   ;;  %vm488_vm12 = vcmask 31744  }
  0x48   : > { %725 = vmatprep.subr.bf16.mxu0 %v923_v37  ;;  %p844_p5 = pnand %p843_p2, %p837_p0 }
  0x49   : > { %331 = vmax.xlane.f32.xlu1 %v330_v14  ;;  %239 = vadd.xlane.f32.xlu0 %v238_v15  ;;  %v305_v15 = vsub.s32 %v302_v3, %v1111_v59 }
  0x4b   : > { %727 = vmatpush3.bf16.msra.mxu0 %v726_v44  ;;  %v228_v44 = vld [vmem:[#allocation2] sm:$0x1] }
  0x4c   : > { %728 = vmatprep.subr.bf16.mxu0 %v923_v37 }
  0x4d   : > { %334 = vmax.xlane.f32.xlu1 %v333_v18  ;;  %242 = vadd.xlane.f32.xlu0 %v241_v19 }
  0x4f   : > { %730 = vmatpush3.bf16.msra.mxu0 %v729_v46 }
  0x51   : > { %337 = vmax.xlane.f32.xlu1 %v336_v22  ;;  %245 = vadd.xlane.f32.xlu0 %v244_v23 }
  0x55   : > { %340 = vmax.xlane.f32.xlu1 %v339_v26  ;;  %248 = vadd.xlane.f32.xlu0 %v247_v27 }
  0x59   : > { %343 = vmax.xlane.f32.xlu1 %v342_v30  ;;  %251 = vadd.xlane.f32.xlu0 %v250_v31 }
  0xca   : > { %v323_v47 = vpop.xlane.xlu1 %322  ;;  %v231_v48 = vpop.xlane.xlu0 %230 }
  0xcb   : > { %v356_v16 = vrot.slane %v323_v47, %v265_v4  ;;  %v266_v17 = vrot.slane %v231_v48, %v265_v4 }
  0xce   : > { %v326_v49 = vpop.xlane.xlu1 %325  ;;  %v234_v50 = vpop.xlane.xlu0 %233 }
  0xcf   : > { %v360_v10 = vrot.slane %v326_v49, %v270_v0  ;;  %v271_v11 = vrot.slane %v234_v50, %v270_v0 }
  0xd1   : > { %v361_v25 = vsel %vm272_vm2, %v360_v10, %v356_v16  ;;  %v273_v26 = vsel %vm272_vm2, %v271_v11, %v266_v17 }
  0xd2   : > { %v329_v52 = vpop.xlane.xlu1 %328  ;;  %v237_v53 = vpop.xlane.xlu0 %236 }
  0xd3   : > { %v365_v13 = vrot.slane %v329_v52, %v277_v2  ;;  %v278_v14 = vrot.slane %v237_v53, %v277_v2  ;;  %v402_v52 = vsel %vm401_vm9, 0.00390625, %v925_v51 }
  0xd5   : > { %v366_v29 = vsel %vm279_vm3, %v365_v13, %v361_v25  ;;  %v280_v30 = vsel %vm279_vm3, %v278_v14, %v273_v26 }
  0xd6   : > { %v332_v55 = vpop.xlane.xlu1 %331  ;;  %v240_v56 = vpop.xlane.xlu0 %239 }
  0xd7   : > { %v370_v18 = vrot.slane %v332_v55, %v284_v5  ;;  %v285_v19 = vrot.slane %v240_v56, %v284_v5  ;;  %v487_v55 = vld [vmem:[%s1194_s2] sm:$0xf] }
  0xd8   : > { %715 = vmatpush3.msk.msra.mxu1 %vm492_vm11, %v487_v55 }
  0xd9   : > { %v371_v33 = vsel %vm286_vm4, %v370_v18, %v366_v29  ;;  %v287_v34 = vsel %vm286_vm4, %v285_v19, %v280_v30 }
  0xda   : > { %v335_v62 = vpop.xlane.xlu1 %334  ;;  %v243_v63 = vpop.xlane.xlu0 %242 }
  0xdb   : > { %v375_v20 = vrot.slane %v335_v62, %v291_v6  ;;  %v292_v21 = vrot.slane %v243_v63, %v291_v6 }
  0xdd   : > { %v376_v35 = vsel %vm293_vm5, %v375_v20, %v371_v33  ;;  %v294_v36 = vsel %vm293_vm5, %v292_v21, %v287_v34 }
  0xde   : > { %v338_v7 = vpop.xlane.xlu1 %337  ;;  %v246_v8 = vpop.xlane.xlu0 %245 }
  0xdf   : > { %v380_v27 = vrot.slane %v338_v7, %v298_v12  ;;  %v299_v28 = vrot.slane %v246_v8, %v298_v12 }
  0xe1   : > { %v381_v39 = vsel %vm300_vm6, %v380_v27, %v376_v35  ;;  %v301_v40 = vsel %vm300_vm6, %v299_v28, %v294_v36 }
  0xe2   : > { %v341_v22 = vpop.xlane.xlu1 %340  ;;  %v249_v23 = vpop.xlane.xlu0 %248 }
  0xe3   : > { %v385_v31 = vrot.slane %v341_v22, %v305_v15  ;;  %v306_v32 = vrot.slane %v249_v23, %v305_v15 }
  0xe5   : > { %v386_v45 = vsel %vm307_vm7, %v385_v31, %v381_v39  ;;  %v308_v46 = vsel %vm307_vm7, %v306_v32, %v301_v40 }
  0xe6   : > { %v344_v37 = vpop.xlane.xlu1 %343  ;;  %v252_v38 = vpop.xlane.xlu0 %251 }
  0xe7   : > { %v390_v42 = vrot.slane %v344_v37, %v312_v24  ;;  %v313_v43 = vrot.slane %v252_v38, %v312_v24 }
  0xe9   : > { %v391_v47 = vsel %vm314_vm8, %v390_v42, %v386_v45  ;;  %v315_v48 = vsel %vm314_vm8, %v313_v43, %v308_v46 }
  0xea   : > { %v393_v49 = vmax.f32 %v320_v41, %v391_v47  ;;  %v317_v50 = vadd.f32 %v315_v48, %v228_v44 }
  0xec   : > { %394 = vst.msk [vmem:[#allocation2 + $0x1] sm:$0x1] %vm209_vm0, %v393_v49  ;;  %319 = vst.msk [vmem:[#allocation2] sm:$0x1] %vm209_vm0, %v317_v50 }
  0xf3   : > { %v398_v53 = vld [vmem:[#allocation2] sm:$0x3] }
  0xf4   : > { %v403_v54 = vmul.f32 %v402_v52, %v398_v53 }
  0xf6   : > { %712 = vmatmul.mubr.msk.f32.vlgmr.msra.gmra.mrb[0].mxu0 %vm412_vm10, %v403_v54 }
 0x1c9   : > { %v482_v56 = vpop.f32.mrb[0].mxu0 }
 0x1ca   : > { %v486_v57 = vmax.f32 %v482_v56, 0.0  ;;  %v713_v58 = vpop.f32.mrb[1].mxu0 }
 0x1cc   : > { %717 = vmatmul.mubr.msk.f32.vlgmr.msra.gmra.mrb[0].mxu1 %vm488_vm12, %v486_v57 }
 0x29f   : > { %v562_v59 = vpop.f32.mrb[0].mxu1 }
 0x2a0   : > { %v567_v60 = vrot.slane %v562_v59, 1  ;;  %v718_v61 = vpop.f32.mrb[1].mxu1 }
 0x2a2   : > { %v569_v62 = vadd.f32 %v567_v60, %v562_v59 }
 0x2a4   : > { %v679_v63 = vmul.f32 -1.442695, %v569_v62 }
 0x2a6   : > { %800 = vpow2.f32 %v679_v63 }
 0x2b0   : > { %v801_v0 = vpop.eup %800 }
 0x2b1   : > { %v573_v1 = vadd.f32 1.0, %v801_v0 }
 0x2b3   : > { %802 = vrcp.f32 %v573_v1 }
 0x2bd   : > { %v803_v2 = vpop.eup %802 }
 0x2be   : > { %576 = vst.msk [vmem:[%s203_s9] sm:$0x1] %vm209_vm0, %v803_v2 }
 0x2bf   : > { %847 = shalt.err (!%p844_p5)
}
 0x2c0   : > { %s848_s11 = scalar_lea.hbm %s1142_s28, 16  ;;  %s852_s19 = scalar_lea.hbm %s1195_s3, 32 }
 0x2c1   : > { %p849_p4 = scmp.ne.s32.totalorder %s1142_s28, %s848_s11  ;;  %p853_p12 = scmp.lt.u32.totalorder %s1142_s28, %s1195_s3 }
 0x2c2   : > { %p854_p1 = scmp.lt.u32.totalorder %s852_s19, %s848_s11  ;;  %p856_p8 = scmp.lt.u32.totalorder %s848_s11, %s1142_s28 }
 0x2c3   : > { %p850_p7 = pnand %p849_p4, %p1203_p9 }
 0x2c4   : > { %p855_p3 = por %p854_p1, %p853_p12 }
 0x2c5   : > { %p851_p10 = pneg %p850_p7 }
 0x2c6   : > { %p857_p11 = por %p856_p8, %p855_p3 }
 0x2c8   : > { %p858_p0 = pnand %p857_p11, %p851_p10 }
 0x2ca   : > { %861 = shalt.err (!%p858_p0)
}
 0x2cb   : > { %733 = dma.vmem_to_hbm [thread:$0]  (%p1203_p9), %s1144_s10, 16, %s1142_s28, %s578_s29  }
 0x2cc PF: > { %s602_s6 = sand.u32 1, %s896_s12   ;;  %p1204_p6 = scmp.ne.s32.totalorder %s1200_s27, 0 }
 0x2cd   : > { %p1205_p13 = scmp.ge.s32.totalorder %s916_s17, 2  ;;  %s603_s8 = scalar_lea.sflag [#allocation5], %s602_s6 }
 0x2cf   : > { %p740_p2 = pnand %p1205_p13, %p1204_p6 }
 0x2d1   : > { %891 = dma.done.wait (!%p740_p2), %s603_s8, 16  }
 0x2d2   : > { %893 = vsyncadd (!%p740_p2), %s603_s8, 4294967280  ;;  %s19_s17 = sadd.s32 1, %s916_s17   ;;  %s1206_s12 = smov %s900_s13 }
 0x2d3   : > { %p16_p5 = scmp.ge.s32.totalorder %s19_s17, 4   ;;  %s1207_s13 = smov %s904_s14 }
 0x2d4   : > { %s1208_s14 = smov %s1003_s26  ;;  %s1209_s15 = smov %s912_s16 }
 0x2d5   : > { %s1210_s16 = smov %s1212_s20  ;;  %18 = sbr.rel (!%p16_p5) target bundleno = 6 (0x6), region = 85 }
 0x2dc   :  { %607 = vsyncpa [#allocation4], 1 }
 0x2dd   :  { %609 = vsyncpa [#allocation4 + $0x1], 1 }
 0x2de   :  { %610 = vsyncpa [#allocation5], 1 }
 0x2df   :  { %612 = vsyncpa [#allocation5 + $0x1], 1 }

</bundles_post_ra>
